<compile_context>
chip_gen: v6e
topology: v6e:2x2x1
jax: 0.10.0
libtpu: 0.0.40
codegen_flags: <defaults>
</compile_context>

<pallas_src>
import functools

import jax
import jax.numpy as jnp
from jax.experimental import pallas as pl
from jax.experimental.pallas import tpu as pltpu


def _round_up(n, m):
    return ((n + m - 1) // m) * m


def _apply_activation(h, activation_name):
    if activation_name == "ReLU":
        return jnp.maximum(h, 0.0)
    if activation_name == "Tanh":
        return jnp.tanh(h)
    if activation_name == "Sigmoid":
        return jax.nn.sigmoid(h)
    if activation_name == "GELU":
        # torch.nn.GELU defaults to the exact erf formulation.
        return jax.nn.gelu(h, approximate=False)
    raise ValueError(f"unsupported activation: {activation_name}")


def mlp_kernel(x_ref, w1_ref, b1_ref, w2_ref, b2_ref, o_ref, *, activation_name):
    # Layer 1 on the MXU: the streamed f32 block is cast to bf16 in-kernel (cheap VPU cast,
    # avoids an extra wrapper-side HBM pass over x); accumulation stays f32.
    x = x_ref[...].astype(jnp.bfloat16)
    h = jnp.dot(x, w1_ref[...], preferred_element_type=jnp.float32)
    h = h + b1_ref[...]                        # f32 bias add (VPU), lane-dense
    # Dropout (eval/inference mode) == identity.
    h = _apply_activation(h, activation_name)  # f32 (VPU / EUP), lane-dense
    # Layer 2 (hidden -> 1) as a block-diagonal segmented reduction on the MXU:
    # out[row, p] = sum_k h[row, p*H + k] * w2[k] for each of the PACK packed samples.
    out = jnp.dot(h, w2_ref[...], preferred_element_type=jnp.float32)
    out = out + b2_ref[0]                      # scalar bias read from SMEM
    # Output block is [rows, PACK]: 8 live lanes per stored row (vs 1 previously); the
    # remaining narrowness costs little since output bytes are ~1/16 of the x stream.
    o_ref[...] = out.astype(o_ref.dtype)


def _vmem_budget_bytes():
    """(working-set budget, vmem_limit_bytes) sized to the running TPU generation."""
    try:
        phys = int(pltpu.get_tpu_info().vmem_capacity_bytes)
    except Exception:
        phys = 64 * 1024 * 1024            # conservative fallback: v7x has 64 MiB per TC
    # Explicit limit: stay well under physical on v7x, allow up to 100 MiB on the
    # 128-MiB generations (v5e / v6e).
    vmem_limit = min(phys - 16 * 1024 * 1024, 100 * 1024 * 1024)
    budget = vmem_limit - 8 * 1024 * 1024  # slack for compiler temporaries not modelled
    return budget, vmem_limit


def _rows_per_tile(budget_bytes, pack, F, H):
    """Max packed rows per tile from a 128-lane-padding-aware VMEM byte model."""
    lanes_x = _round_up(pack * F, 128)
    lanes_h = _round_up(pack * H, 128)
    lanes_o = _round_up(pack, 128)
    streamed = 2 * 4 * (lanes_x + lanes_o)                    # double-buffered f32 in/out blocks
    interm = 2 * lanes_x + 3 * 4 * lanes_h + 2 * 4 * lanes_o  # bf16 x copy + h chain + out temps
    per_row = streamed + interm
    resident = (pack * F) * (pack * H) * 2 + 4 * (pack * H) * (1 + pack) + 4096
    return max(16, (budget_bytes - resident) // per_row)


def _choose_block_rows(Bp, pack, F, H, budget_bytes):
    max_rows = _rows_per_tile(budget_bytes, pack, F, H)
    # ~32K samples per grid step comfortably amortizes the ~0.35 us/step pipeline overhead.
    max_rows = min(max_rows, max(16, 32768 // pack))
    # Megacore (v7x): once there is real work, keep the grid >= 2 steps so the "parallel"
    # batch axis can shard across both TensorCores.
    if Bp * pack >= 16384:
        max_rows = min(max_rows, _round_up(pl.cdiv(Bp, 2), 16))
    if Bp <= max_rows:
        return Bp                              # single full-extent block
    return max(16, (max_rows // 16) * 16)      # 16-row multiple (bf16/f32 sublane friendly)


def simple_model_forward(x, w1, b1, w2, b2, *, activation_name="ReLU", block_rows=None):
    """Fused MLP forward.

    x  : [B, in_features] float32
    w1 : [in_features, hidden] float32   (== torch W1.T)
    b1 : [1, hidden] float32
    w2 : [hidden, 1] float32             (== torch W2.T)
    b2 : [1, 1] float32
    returns [B, 1] float32
    """
    B, F = x.shape
    H = w1.shape[1]

    # Lane-packing factor: PACK samples share one 128-lane row of the packed input.
    pack = 128 // F if (F <= 128 and 128 % F == 0) else 1

    # The packing reshape needs B to be a multiple of PACK; pad at most PACK-1 rows.
    # (Tile-size tails are handled by the pl.cdiv grid + masked partial blocks, not padding.)
    Bs = _round_up(B, pack)
    if Bs != B:
        x = jnp.pad(x, ((0, Bs - B), (0, 0)))
    Bp = Bs // pack
    x_packed = x.reshape(Bp, pack * F)          # free: rows are contiguous in HBM

    # Packed (block-diagonal) weights — built once wrapper-side, tiny, VMEM-resident.
    f32 = jnp.float32
    eye_p = jnp.eye(pack, dtype=f32)
    w1_packed = (jnp.einsum("pq,fh->pfqh", eye_p, w1.astype(f32))
                 .reshape(pack * F, pack * H).astype(jnp.bfloat16))       # MXU feed
    b1_packed = jnp.tile(b1.reshape(1, H).astype(f32), (1, pack))
    w2_packed = (jnp.einsum("pq,h->phq", eye_p, w2.reshape(H).astype(f32))
                 .reshape(pack * H, pack))
    b2_s = b2.reshape(1).astype(f32)            # scalar, lives in SMEM

    budget, vmem_limit = _vmem_budget_bytes()
    if block_rows is None:
        block_rows = _choose_block_rows(Bp, pack, F, H, budget)
    block_rows = min(int(block_rows), Bp)
    if block_rows < Bp:
        block_rows = max(8, (block_rows // 8) * 8)

    grid = (pl.cdiv(Bp, block_rows),)
    kernel = functools.partial(mlp_kernel, activation_name=activation_name)

    out_packed = pl.pallas_call(
        kernel,
        out_shape=jax.ShapeDtypeStruct((Bp, pack), jnp.float32),
        grid_spec=pltpu.PrefetchScalarGridSpec(
            num_scalar_prefetch=0,
            grid=grid,
            in_specs=[
                pl.BlockSpec((block_rows, pack * F), lambda i: (i, 0)),   # x: streamed f32 tiles
                pl.BlockSpec((pack * F, pack * H), lambda i: (0, 0)),     # w1 (bf16): resident
                pl.BlockSpec((1, pack * H), lambda i: (0, 0)),            # b1: resident
                pl.BlockSpec((pack * H, pack), lambda i: (0, 0)),         # w2: resident
                pl.BlockSpec(memory_space=pltpu.MemorySpace.SMEM),        # b2 scalar in SMEM
            ],
            out_specs=pl.BlockSpec((block_rows, pack), lambda i: (i, 0)),
        ),
        compiler_params=pltpu.CompilerParams(
            dimension_semantics=("parallel",),   # shard the batch loop across TCs on v7x
            vmem_limit_bytes=int(vmem_limit),
        ),
    )(x_packed, w1_packed, b1_packed, w2_packed, b2_s)

    # (Bp, PACK) -> (B, 1): free row-major reshape + slice of any PACK-pad tail rows.
    return out_packed.reshape(-1, 1)[:B]


def init_params(key, in_features, hidden_units):
    """Deterministic init mimicking nn.Linear (uniform(-1/sqrt(fan_in), +1/sqrt(fan_in)))."""
    k1, k2, k3, k4 = jax.random.split(key, 4)
    bound1 = 1.0 / (in_features ** 0.5)
    bound2 = 1.0 / (hidden_units ** 0.5)
    w1 = jax.random.uniform(k1, (in_features, hidden_units), jnp.float32, -bound1, bound1)
    b1 = jax.random.uniform(k2, (1, hidden_units), jnp.float32, -bound1, bound1)
    w2 = jax.random.uniform(k3, (hidden_units, 1), jnp.float32, -bound2, bound2)
    b2 = jax.random.uniform(k4, (1, 1), jnp.float32, -bound2, bound2)
    return w1, b1, w2, b2


def _reference_forward(x, w1, b1, w2, b2, activation_name="ReLU"):
    """Pure-f32 plain-JAX reference matching the PyTorch module in eval mode."""
    h = x @ w1 + b1.reshape(1, -1)
    h = _apply_activation(h, activation_name)
    return h @ w2 + b2.reshape(1, 1)


if __name__ == "__main__":
    # Small shapes consistent with the module: batch=8, in_features=16, hidden=32.
    batch, in_features, hidden_units = 8, 16, 32
    activation_name = "ReLU"

    key = jax.random.PRNGKey(0)
    kx, kp = jax.random.split(key)
    x = jax.random.normal(kx, (batch, in_features), jnp.float32)
    w1, b1, w2, b2 = init_params(kp, in_features, hidden_units)

    out = jax.block_until_ready(
        simple_model_forward(x, w1, b1, w2, b2, activation_name=activation_name))
    assert out.shape == (batch, 1)

    ref = _reference_forward(x, w1, b1, w2, b2, activation_name)
    # Layer 1 runs in bf16 inside the kernel -> small expected divergence vs pure-f32 math.
    assert jnp.allclose(out, ref, atol=2e-2, rtol=2e-2), float(jnp.max(jnp.abs(out - ref)))

    # Second call: batch not a multiple of the packing factor, forced multi-step grid with a
    # partial (masked) last block, different activation.
    batch2 = 300
    x2 = jax.random.normal(jax.random.PRNGKey(1), (batch2, in_features), jnp.float32)
    out2 = jax.block_until_ready(
        simple_model_forward(x2, w1, b1, w2, b2, activation_name="Tanh", block_rows=16))
    ref2 = _reference_forward(x2, w1, b1, w2, b2, "Tanh")
    assert out2.shape == (batch2, 1)
    assert jnp.allclose(out2, ref2, atol=2e-2, rtol=2e-2), float(jnp.max(jnp.abs(out2 - ref2)))

    print("KERNEL_OK")
</pallas_src>

<mosaic_0001>
module attributes {stable_mosaic.version = 11 : i64} {
  func.func @mlp_kernel(%arg0: i32, %arg1: memref<1x128xf32, #tpu.memory_space<vmem>>, %arg2: memref<128x256xbf16, #tpu.memory_space<vmem>>, %arg3: memref<1x256xf32, #tpu.memory_space<vmem>>, %arg4: memref<256x8xf32, #tpu.memory_space<vmem>>, %arg5: memref<1xf32, #tpu.memory_space<smem>>, %arg6: memref<1x8xf32, #tpu.memory_space<vmem>>) attributes {dimension_semantics = [#tpu.dimension_semantics<parallel>], iteration_bounds = array<i64: 1>, scalar_prefetch = 0 : i64, scratch_operands = 0 : i64, tpu.core_type = #tpu.core_type<tc>, window_params = [{transform_indices = @transform_0, window_bounds = array<i64: 1, 128>}, {pipeline_mode = #tpu.pipeline_mode<synchronous>, transform_indices = @transform_1, window_bounds = array<i64: 128, 256>}, {pipeline_mode = #tpu.pipeline_mode<synchronous>, transform_indices = @transform_2, window_bounds = array<i64: 1, 256>}, {pipeline_mode = #tpu.pipeline_mode<synchronous>, transform_indices = @transform_3, window_bounds = array<i64: 256, 8>}, {transform_indices = @transform_4, window_bounds = array<i64: 1>}, {transform_indices = @transform_5, window_bounds = array<i64: 1, 8>}]} {
    %c0 = arith.constant 0 : index
    %c0_0 = arith.constant 0 : index
    %0 = vector.load %arg1[%c0, %c0_0] : memref<1x128xf32, #tpu.memory_space<vmem>>, vector<1x128xf32>
    %1 = arith.truncf %0 : vector<1x128xf32> to vector<1x128xbf16>
    %c0_1 = arith.constant 0 : index
    %c0_2 = arith.constant 0 : index
    %2 = vector.load %arg2[%c0_1, %c0_2] : memref<128x256xbf16, #tpu.memory_space<vmem>>, vector<128x256xbf16>
    %cst = arith.constant dense<0.000000e+00> : vector<1x256xf32>
    %3 = tpu.matmul %1, %2, %cst {dimension_numbers = #tpu.dot_dimension_numbers<[1], [0], [0], [1], [0, 0, 1, 1], [], []>} : vector<1x128xbf16>, vector<128x256xbf16>, vector<1x256xf32> -> vector<1x256xf32>
    %c0_3 = arith.constant 0 : index
    %c0_4 = arith.constant 0 : index
    %4 = vector.load %arg3[%c0_3, %c0_4] : memref<1x256xf32, #tpu.memory_space<vmem>>, vector<1x256xf32>
    %5 = arith.addf %3, %4 : vector<1x256xf32>
    %cst_5 = arith.constant 0.000000e+00 : f32
    %6 = vector.broadcast %cst_5 : f32 to vector<1x256xf32>
    %7 = arith.maximumf %5, %6 : vector<1x256xf32>
    %c0_6 = arith.constant 0 : index
    %c0_7 = arith.constant 0 : index
    %8 = vector.load %arg4[%c0_6, %c0_7] : memref<256x8xf32, #tpu.memory_space<vmem>>, vector<256x8xf32>
    %cst_8 = arith.constant dense<0.000000e+00> : vector<1x8xf32>
    %9 = tpu.matmul %7, %8, %cst_8 {dimension_numbers = #tpu.dot_dimension_numbers<[1], [0], [0], [1], [0, 0, 1, 1], [], []>} : vector<1x256xf32>, vector<256x8xf32>, vector<1x8xf32> -> vector<1x8xf32>
    %c0_9 = arith.constant 0 : index
    %10 = memref.load %arg5[%c0_9] : memref<1xf32, #tpu.memory_space<smem>>
    %11 = vector.broadcast %10 : f32 to vector<1x8xf32>
    %12 = arith.addf %9, %11 : vector<1x8xf32>
    %c0_10 = arith.constant 0 : index
    %c0_11 = arith.constant 0 : index
    %13 = vector.load %arg6[%c0_10, %c0_11] : memref<1x8xf32, #tpu.memory_space<vmem>>, vector<1x8xf32>
    tpu.vector_store %arg6[%c0_10, %c0_11], %12 {strides = array<i32>} : memref<1x8xf32, #tpu.memory_space<vmem>>, vector<1x8xf32>,
    return
  }
  func.func @transform_0(%arg0: i32) -> (i32, i32) {
    %c0_i32 = arith.constant 0 : i32
    %c0_i32_0 = arith.constant 0 : i32
    return %arg0, %c0_i32 : i32, i32
  }
  func.func @transform_1(%arg0: i32) -> (i32, i32) {
    %c0_i32 = arith.constant 0 : i32
    %c0_i32_0 = arith.constant 0 : i32
    %c0_i32_1 = arith.constant 0 : i32
    return %c0_i32, %c0_i32_0 : i32, i32
  }
  func.func @transform_2(%arg0: i32) -> (i32, i32) {
    %c0_i32 = arith.constant 0 : i32
    %c0_i32_0 = arith.constant 0 : i32
    %c0_i32_1 = arith.constant 0 : i32
    return %c0_i32, %c0_i32_0 : i32, i32
  }
  func.func @transform_3(%arg0: i32) -> (i32, i32) {
    %c0_i32 = arith.constant 0 : i32
    %c0_i32_0 = arith.constant 0 : i32
    %c0_i32_1 = arith.constant 0 : i32
    return %c0_i32, %c0_i32_0 : i32, i32
  }
  func.func @transform_4(%arg0: i32) -> i32 {
    %c0_i32 = arith.constant 0 : i32
    %c0_i32_0 = arith.constant 0 : i32
    return %c0_i32 : i32
  }
  func.func @transform_5(%arg0: i32) -> (i32, i32) {
    %c0_i32 = arith.constant 0 : i32
    %c0_i32_0 = arith.constant 0 : i32
    return %arg0, %c0_i32 : i32, i32
  }
}

</mosaic_0001>

<bundles_post_ra>
// kernel: tpu_custom_call.1
= control target key start
LH: loop header
LB: loop body
LE: loop exit
PB: predicated region body
PF: predicated region fallthrough
CT: control target
= control target key end

     0   :  { %v395_v2 = vmov 0   ;;  %s583_s0 = inlined_call_operand.vmem [shape: f32[1,128], index: 0, kind: input, shape index: {}]   ;;  %s584_s1 = inlined_call_operand.vmem [shape: bf16[128,256], index: 1, kind: input, shape index: {}]   ;;  %s585_s2 = inlined_call_operand.vmem [shape: f32[1,256], index: 2, kind: input, shape index: {}]   ;;  %s586_s3 = inlined_call_operand.vmem [shape: f32[256,8], index: 3, kind: input, shape index: {}]   ;;  %s587_s4 = inlined_call_operand.<no memory space> [shape: f32[1], index: 4, kind: input, shape index: {}]   ;;  %s588_s5 = inlined_call_operand.hbm [shape: f32[1,8], index: 5, kind: output, shape index: {}]  }
   0x1   :  { %v349_v0 = vld [vmem:[%s584_s1 + $0x74] ss:$8 sps:$4 sm:$0xff]   ;;  %v351_v1 = vld [vmem:[%s584_s1 + $0x70] ss:$8 sps:$4 sm:$0xff]   ;;  %165 = vmatprep.mubr.bf16.mxu0 %v395_v2  ;;  %v352_v3 = vld [vmem:[%s584_s1 + $0x64] ss:$8 sps:$4 sm:$0xff]  }
   0x2   :  { %133 = vmatprep.subr.bf16.mxu0 %v349_v0  ;;  %v354_v4 = vld [vmem:[%s584_s1 + $0x60] ss:$8 sps:$4 sm:$0xff]   ;;  %v355_v5 = vld [vmem:[%s584_s1 + $0x54] ss:$8 sps:$4 sm:$0xff]   ;;  %v357_v6 = vld [vmem:[%s584_s1 + $0x50] ss:$8 sps:$4 sm:$0xff]  }
   0x3   :  { %134 = vmatpush1.bf16.msra.mxu0 %v351_v1  ;;  %v358_v7 = vld [vmem:[%s584_s1 + $0x44] ss:$8 sps:$4 sm:$0xff]   ;;  %v360_v8 = vld [vmem:[%s584_s1 + $0x40] ss:$8 sps:$4 sm:$0xff]   ;;  %v207_v9 = vld [vmem:[%s586_s3 + $0xf8] sm:$0xff] }
   0x4   :  { %135 = vmatprep.subr.bf16.mxu0 %v352_v3  ;;  %v191_v10 = vld [vmem:[%s586_s3 + $0x78] sm:$0xff]  ;;  %v206_v11 = vld [vmem:[%s586_s3 + $0xf0] sm:$0xff]  ;;  %312 = vmatprep.subr.mxu1 %v207_v9  ;;  %v205_v14 = vld [vmem:[%s586_s3 + $0xe8] sm:$0xff] }
   0x5   :  { %v361_v12 = vld [vmem:[%s584_s1 + $0x34] ss:$8 sps:$4 sm:$0xff]   ;;  %313 = vmatpush3.msra.mxu1 %v191_v10  ;;  %v189_v15 = vld [vmem:[%s586_s3 + $0x68] sm:$0xff]  ;;  %v363_v16 = vld [vmem:[%s584_s1 + $0x30] ss:$8 sps:$4 sm:$0xff]  }
   0x6   :  { %v190_v13 = vld [vmem:[%s586_s3 + $0x70] sm:$0xff]  ;;  %314 = vmatprep.subr.mxu1 %v206_v11  ;;  %v204_v17 = vld [vmem:[%s586_s3 + $0xe0] sm:$0xff]  ;;  %v203_v20 = vld [vmem:[%s586_s3 + $0xd8] sm:$0xff] }
   0x7   :  { %136 = vmatpush1.bf16.msra.mxu0 %v354_v4  ;;  %315 = vmatpush3.msra.mxu1 %v190_v13  ;;  %v364_v18 = vld [vmem:[%s584_s1 + $0x24] ss:$8 sps:$4 sm:$0xff]   ;;  %v187_v21 = vld [vmem:[%s586_s3 + $0x58] sm:$0xff]  ;;  %v366_v22 = vld [vmem:[%s584_s1 + $0x20] ss:$8 sps:$4 sm:$0xff]  }
   0x8   :  { %137 = vmatprep.subr.bf16.mxu0 %v355_v5  ;;  %316 = vmatprep.subr.mxu1 %v205_v14  ;;  %v188_v19 = vld [vmem:[%s586_s3 + $0x60] sm:$0xff]  ;;  %v202_v23 = vld [vmem:[%s586_s3 + $0xd0] sm:$0xff] }
   0x9   :  { %317 = vmatpush3.msra.mxu1 %v189_v15 }
   0xa   :  { %318 = vmatprep.subr.mxu1 %v204_v17 }
   0xb   :  { %138 = vmatpush1.bf16.msra.mxu0 %v357_v6  ;;  %319 = vmatpush3.msra.mxu1 %v188_v19 }
   0xc   :  { %139 = vmatprep.subr.bf16.mxu0 %v358_v7 }
   0xf   :  { %140 = vmatpush1.bf16.msra.mxu0 %v360_v8 }
  0x10   :  { %141 = vmatprep.subr.bf16.mxu0 %v361_v12 }
  0x13   :  { %142 = vmatpush1.bf16.msra.mxu0 %v363_v16 }
  0x14   :  { %11 = vsyncpa [#allocation4], 0  ;;  %143 = vmatprep.subr.bf16.mxu0 %v364_v18  ;;  %v367_v24 = vld [vmem:[%s584_s1 + $0x14] ss:$8 sps:$4 sm:$0xff]   ;;  %320 = vmatprep.subr.mxu1 %v203_v20  ;;  %v201_v26 = vld [vmem:[%s586_s3 + $0xc8] sm:$0xff]  ;;  %v123_v51 = vlaneseq  ;;  %v209_v3 = vstv %s587_s4  ;;  %vm280_vm0 = vcmask 57344  }
  0x15   :  { %v186_v25 = vld [vmem:[%s586_s3 + $0x50] sm:$0xff]  ;;  %321 = vmatpush3.msra.mxu1 %v187_v21  ;;  %v185_v27 = vld [vmem:[%s586_s3 + $0x48] sm:$0xff]  ;;  %v200_v29 = vld [vmem:[%s586_s3 + $0xc0] sm:$0xff] }
  0x16   :  { %322 = vmatprep.subr.mxu1 %v202_v23  ;;  %v369_v28 = vld [vmem:[%s584_s1 + $0x10] ss:$8 sps:$4 sm:$0xff]   ;;  %v370_v30 = vld [vmem:[%s584_s1 + $0x4] ss:$8 sps:$4 sm:$0xff]   ;;  %v372_v34 = vld [vmem:[%s584_s1] ss:$8 sps:$4 sm:$0xff]  }
  0x17   :  { %144 = vmatpush1.bf16.msra.mxu0 %v366_v22  ;;  %323 = vmatpush3.msra.mxu1 %v186_v25  ;;  %v184_v31 = vld [vmem:[%s586_s3 + $0x40] sm:$0xff]  ;;  %v199_v32 = vld [vmem:[%s586_s3 + $0xb8] sm:$0xff]  ;;  %v198_v36 = vld [vmem:[%s586_s3 + $0xb0] sm:$0xff]  ;;  %v124_v52 = vshrl.u32 %v123_v51, 7 }
  0x18   :  { %145 = vmatprep.subr.bf16.mxu0 %v367_v24  ;;  %324 = vmatprep.subr.mxu1 %v201_v26  ;;  %v183_v33 = vld [vmem:[%s586_s3 + $0x38] sm:$0xff]  ;;  %v23_v35 = vld [vmem:[%s583_s0] sm:$0x1]  ;;  %v182_v37 = vld [vmem:[%s586_s3 + $0x30] sm:$0xff] }
  0x19   :  { %325 = vmatpush3.msra.mxu1 %v185_v27  ;;  %v197_v38 = vld [vmem:[%s586_s3 + $0xa8] sm:$0xff]  ;;  %v24_v39 = vpack.c.bf16 %v23_v35, %v23_v35  ;;  %v196_v41 = vld [vmem:[%s586_s3 + $0xa0] sm:$0xff]  ;;  %v195_v43 = vld [vmem:[%s586_s3 + $0x98] sm:$0xff]  ;;  %v125_v53 = vsub.s32 0, %v124_v52  ;;  %v129_v55 = vsub.s32 1, %v124_v52 }
  0x1a   :  { %326 = vmatprep.subr.mxu1 %v200_v29  ;;  %v181_v40 = vld [vmem:[%s586_s3 + $0x28] sm:$0xff]  ;;  %v180_v42 = vld [vmem:[%s586_s3 + $0x20] sm:$0xff]  ;;  %v179_v44 = vld [vmem:[%s586_s3 + $0x18] sm:$0xff] }
  0x1b   :  { %146 = vmatpush1.bf16.msra.mxu0 %v369_v28  ;;  %327 = vmatpush3.msra.mxu1 %v184_v31  ;;  %v194_v45 = vld [vmem:[%s586_s3 + $0x90] sm:$0xff]  ;;  %v193_v47 = vld [vmem:[%s586_s3 + $0x88] sm:$0xff]  ;;  %v192_v49 = vld [vmem:[%s586_s3 + $0x80] sm:$0xff] }
  0x1c   :  { %147 = vmatprep.subr.bf16.mxu0 %v370_v30  ;;  %328 = vmatprep.subr.mxu1 %v199_v32  ;;  %v178_v46 = vld [vmem:[%s586_s3 + $0x10] sm:$0xff]  ;;  %v177_v48 = vld [vmem:[%s586_s3 + $0x8] sm:$0xff]  ;;  %v176_v50 = vld [vmem:[%s586_s3] sm:$0xff] }
  0x1d   :  { %329 = vmatpush3.msra.mxu1 %v183_v33  ;;  %v41_v54 = vld [vmem:[%s585_s2] sm:$0x3]  ;;  %s396_s2 = smov [#allocation3]  }
  0x1e   :  { %330 = vmatprep.subr.mxu1 %v198_v36  ;;  %v126_v56 = vrot.slane %v41_v54, %v125_v53  ;;  %v130_v57 = vrot.slane %v41_v54, %v129_v55  ;;  %s288_s17 = sshll.u32 %s396_s2, 4  ;;  %s289_s17 = int_to_ptr.vmem [resolvable:$true] %s288_s17 }
  0x1f   :  { %148 = vmatpush1.bf16.msra.mxu0 %v372_v34  ;;  %331 = vmatpush3.msra.mxu1 %v182_v37  ;;  %s373_s18 = scalar_lea.vmem %s289_s17, 16  ;;  %s377_s1 = scalar_lea.vmem %s289_s17, 32 }
  0x20   :  { %332 = vmatprep.subr.mxu1 %v197_v38  ;;  %p374_p0 = scmp.ne.s32.totalorder %s289_s17, %s373_s18  ;;  %p378_p1 = scmp.lt.s32.totalorder %s289_s17, %s289_s17 }
  0x21   :  { %333 = vmatpush3.msra.mxu1 %v181_v40  ;;  %p379_p2 = scmp.lt.s32.totalorder %s377_s1, %s373_s18 }
  0x22   :  { %166 = vmatmul.mubr.bf16.vlgmr.msra.gmra.mxu0 %v24_v39  ;;  %334 = vmatprep.subr.mxu1 %v196_v41 }
  0x23   :  { %335 = vmatpush3.msra.mxu1 %v180_v42  ;;  %p380_p3 = por %p379_p2, %p378_p1 }
  0x24   :  { %336 = vmatprep.subr.mxu1 %v195_v43 }
  0x25   :  { %337 = vmatpush3.msra.mxu1 %v179_v44  ;;  %p381_p4 = pnand %p380_p3, %p374_p0 }
  0x26   :  { %338 = vmatprep.subr.mxu1 %v194_v45 }
  0x27   :  { %339 = vmatpush3.msra.mxu1 %v178_v46 }
  0x28   :  { %340 = vmatprep.subr.mxu1 %v193_v47 }
  0x29   :  { %341 = vmatpush3.msra.mxu1 %v177_v48 }
  0x2a   :  { %342 = vmatprep.subr.mxu1 %v192_v49 }
  0x2b   :  { %343 = vmatpush3.msra.mxu1 %v176_v50 }
  0xe2   :  { %v167_v58 = vpop.f32.mrf.mxu0 }
  0xe3   :  { %v168_v59 = vadd.f32 %v167_v58, %v126_v56 }
  0xe4   :  { %v169_v60 = vpop.f32.mrf.mxu0 }
  0xe5   :  { %v170_v61 = vadd.f32 %v169_v60, %v130_v57  ;;  %v174_v0 = vmax.f32 %v168_v59, 0.0 }
  0xe6   :  { %v171_v62 = vpop.f32.mrf.mxu0 }
  0xe7   :  { %v175_v63 = vmax.f32 %v170_v61, 0.0 }
  0xe8   :  { %v172_v1 = vpop.f32.mrf.mxu0 }
  0xe9   :  { %274 = vmatprep.mubr.f32.mxu1 %v175_v63 }
  0xea   :  { %275 = vmatmul.mubr.f32.vlgmr.msra.gmra.mxu1 %v174_v0 }
 0x1aa   :  { %v344_v2 = vpop.f32.mrf.mxu1 }
 0x1ac   :  { %v345_v4 = vpop.f32.mrf.mxu1 }
 0x1ad   :  { %v346_v5 = vadd.f32 %v345_v4, %v344_v2 }
 0x1af   :  { %v277_v6 = vadd.f32 %v346_v5, %v209_v3 }
 0x1b1   :  { %281 = vst.msk [vmem:[#allocation3] sm:$0x1] %vm280_vm0, %v277_v6 }
 0x1b2   :  { %384 = shalt.err (!%p381_p4)
}
 0x1b3   :  { %291 = dma.vmem_to_hbm [thread:$0]  %s289_s17, 16, %s588_s5, [#allocation4]  }
 0x1b4   :  { %393 = dma.done.wait [#allocation4], 16  }
 0x1b5   :  { %394 = vsyncadd [#allocation4], 4294967280 }
 0x1b6   :  { %295 = vsyncpa [#allocation4], 1 }

</bundles_post_ra>
